<compile_context>
chip_gen: v5e
topology: v5e:2x2
jax: 0.10.0
libtpu: 0.0.40
codegen_flags: <defaults>
</compile_context>

<pallas_src>
import functools

import jax
import jax.numpy as jnp
from jax import lax
from jax.experimental import pallas as pl
from jax.experimental.pallas import tpu as pltpu

BN_EPS = 1e-5


# ----------------------------------------------------------------------------
# helpers
# ----------------------------------------------------------------------------
def _round_up(v, m):
    return (v + m - 1) // m * m


def _vmem_budget_bytes():
    """Generation-aware scoped-VMEM budget: ~half of physical VMEM.
    v5e/v6e (128 MiB) -> 64 MiB; v7x (64 MiB) -> 32 MiB; fallback 32 MiB."""
    try:
        cap = int(pltpu.get_tpu_info().vmem_capacity_bytes)
    except Exception:                                    # pragma: no cover
        cap = 64 * 1024 * 1024
    return max(32 * 1024 * 1024, min(cap // 2, 96 * 1024 * 1024))


def _pick_row_tile(h_dim, per_row_bytes, fixed_bytes, budget):
    """Largest multiple-of-8 divisor of H whose per-step VMEM bill fits."""
    cands = sorted(t for t in range(8, h_dim + 1, 8) if h_dim % t == 0)
    if not cands:
        return h_dim                     # block == full dim is always legal
    best = cands[0]
    for t in cands:
        if fixed_bytes + t * per_row_bytes <= budget:
            best = t
    return best


def _band_weights_deep(w4, w_out, w_p, k, depth_pad):
    """w4: (K, K, C_in, C_out) -> (K*depth_pad, W*C_out) so that
    h[r, w*C_out+o] = concat_ky(xpad[r+ky]) @ W_deep  reproduces the conv.
    Each ky block is zero-padded from (W+2p)*C_in rows to depth_pad rows so the
    contraction depth is a multiple of 128 (full-width loads / MXU passes)."""
    c_in, c_out = w4.shape[2], w4.shape[3]
    depth = w_p * c_in
    blocks = []
    for ky in range(k):
        t_ky = jnp.zeros((w_p, c_in, w_out, c_out), jnp.float32)
        for kx in range(k):
            d = jnp.eye(w_p, w_out, k=-kx, dtype=jnp.float32)   # d[w+kx, w] = 1
            t_ky = t_ky + jnp.einsum("pw,io->piwo", d, w4[ky, kx])
        t2 = t_ky.reshape(depth, w_out * c_out)
        t2 = jnp.pad(t2, ((0, depth_pad - depth), (0, 0)))
        blocks.append(t2)
    return jnp.concatenate(blocks, axis=0)               # (K*depth_pad, lanes)


# ----------------------------------------------------------------------------
# Phase 1: conv (single deep MXU contraction) + per-tile BatchNorm partials
# ----------------------------------------------------------------------------
def conv_stats_kernel(x_hbm, wb_ref, h_ref, stats_ref, xwin, dma_sem, *,
                      k, row_tile, pad):
    """x_hbm:  (N, H+2p, depth_pad) padded slab, memory_space=pl.ANY (HBM)
       wb_ref: (K*depth_pad, W*C_out) banded conv weight (constant index_map;
               fetched once by the pipeline, stays resident)
       h_ref:  (row_tile, W*C_out)   lane-dense conv output tile
       stats:  (2, W*C_out)          per-tile [sum, sum-of-squares] (f32)
       xwin:   (row_tile+2p, depth_pad) VMEM scratch for the overlapping window
    """
    n = pl.program_id(0)
    j = pl.program_id(1)
    row0 = j * row_tile
    if row_tile % 8 == 0:
        row0 = pl.multiple_of(row0, 8)

    # one overlapping window per step -- no K-fold HBM duplication of x.
    cp = pltpu.make_async_copy(
        x_hbm.at[n, pl.ds(row0, row_tile + 2 * pad), :], xwin, dma_sem.at[0])
    cp.start()
    cp.wait()

    # build the deep LHS in VMEM (K shifted views, lane-aligned pieces) and do
    # ONE MXU contraction with f32 accumulation.
    x_deep = jnp.concatenate(
        [xwin[pl.ds(ky, row_tile), :] for ky in range(k)], axis=-1)
    acc = jnp.dot(x_deep, wb_ref[...], preferred_element_type=jnp.float32)

    # NOTE: conv bias intentionally dropped -- training-mode BatchNorm subtracts
    # the batch mean immediately after, so a per-channel bias cancels exactly
    # (and the module's conv is bias=False anyway).
    h_ref[...] = acc.astype(h_ref.dtype)                      # lane-dense store
    stats_ref[0:1, :] = jnp.sum(acc, axis=0, keepdims=True)   # one-pass stats
    stats_ref[1:2, :] = jnp.sum(acc * acc, axis=0, keepdims=True)


# ----------------------------------------------------------------------------
# Phase 2: out = relu(scale * h + shift)   (BN affine + modulation pre-folded)
# ----------------------------------------------------------------------------
def apply_mod_kernel(h_ref, scale_ref, shift_ref, out_ref):
    """h_ref/out_ref: (row_tile, W*C_out) (aliased); scale/shift: (1, W*C_out)."""
    hv = h_ref[...].astype(jnp.float32)
    out = jnp.maximum(hv * scale_ref[...] + shift_ref[...], 0.0)
    out_ref[...] = out.astype(out_ref.dtype)


# ----------------------------------------------------------------------------
# Wrapper
# ----------------------------------------------------------------------------
@functools.partial(jax.jit,
                   static_argnames=("kernel_size", "row_tile", "use_bf16"))
def modulated_conv_block_2d(x_nchw, cond, params, kernel_size=3, row_tile=None,
                            use_bf16=True):
    """x_nchw: (N, C_in, H, W);  cond: (N, Cond, L) with L == W.  Returns NCHW f32."""
    w_conv, b_conv, bn_w, bn_b, w_mod, b_mod = params
    del b_conv        # exact cancellation under training-mode BN (see kernel)
    n, c_in, h, w = x_nchw.shape
    c_out = w_conv.shape[0]
    _, cond_dim, l = cond.shape
    k = kernel_size
    pad = k // 2
    assert l == w, "conditioning length L must equal spatial width W"
    assert w_conv.shape == (c_out, c_in, k, k)

    w_p = w + 2 * pad
    lanes = w * c_out                                     # lane-dense minor dim
    depth = w_p * c_in
    depth_pad = _round_up(depth, 128)                     # full-width contraction
    cdt = jnp.bfloat16 if use_bf16 else jnp.float32
    ebytes = 2 if use_bf16 else 4

    vmem_budget = _vmem_budget_bytes()

    # ---- phase-1 row tile: per-step VMEM bill vs generation-aware budget -----
    per_row1 = (depth_pad * ebytes                 # xwin scratch
                + k * depth_pad * ebytes           # concatenated deep LHS temp
                + 2 * lanes * ebytes)              # h block (double-buffered)
    fixed1 = (2 * pad * depth_pad * ebytes         # window halo rows
              + 2 * k * depth_pad * lanes * ebytes  # resident weight (2 slots)
              + 4 * 2 * lanes * 4)                  # stats blocks
    if row_tile is None:
        rt1 = _pick_row_tile(h, per_row1, fixed1, int(vmem_budget * 0.7))
    else:
        rt1 = row_tile
        assert h % rt1 == 0 and (rt1 % 8 == 0 or rt1 == h)
    num_ht = h // rt1

    # ---- x prep: single padded slab, lane-padded to depth_pad, pre-cast ------
    x_nhwc = jnp.transpose(x_nchw, (0, 2, 3, 1)).astype(jnp.float32)
    xpad = jnp.pad(x_nhwc, ((0, 0), (pad, pad), (pad, pad), (0, 0)))
    xflat = xpad.reshape(n, h + 2 * pad, depth)
    xflat = jnp.pad(xflat, ((0, 0), (0, 0), (0, depth_pad - depth))).astype(cdt)

    w4 = jnp.transpose(w_conv, (2, 3, 1, 0)).astype(jnp.float32)  # (K,K,Cin,Cout)
    w_deep = _band_weights_deep(w4, w, w_p, k, depth_pad).astype(cdt)

    # ---- phase 1: conv + per-tile BN partials, gridded & pipelined -----------
    conv_flops = 2 * n * h * (k * depth_pad) * lanes
    conv_bytes = (xflat.size * ebytes + w_deep.size * ebytes
                  + n * h * lanes * ebytes + n * num_ht * 2 * lanes * 4)
    h_conv, stats = pl.pallas_call(
        functools.partial(conv_stats_kernel, k=k, row_tile=rt1, pad=pad),
        grid=(n, num_ht),
        in_specs=[
            pl.BlockSpec(memory_space=pl.ANY),            # padded x slab (HBM)
            # constant index_map => the pipeline fetches the weight once and
            # keeps it resident.  TODO(synk): lane-tile this (extra grid axis
            # over W*C_out) at production channel counts so v7x's 64 MiB VMEM
            # holds only a column slab per step.
            pl.BlockSpec((k * depth_pad, lanes), lambda i, j: (0, 0)),
        ],
        out_specs=(
            pl.BlockSpec((None, rt1, lanes), lambda i, j: (i, j, 0)),
            pl.BlockSpec((None, None, 2, lanes), lambda i, j: (i, j, 0, 0)),
        ),
        out_shape=(
            jax.ShapeDtypeStruct((n, h, lanes), cdt),
            jax.ShapeDtypeStruct((n, num_ht, 2, lanes), jnp.float32),
        ),
        scratch_shapes=[
            pltpu.VMEM((rt1 + 2 * pad, depth_pad), cdt),  # overlapping window
            pltpu.SemaphoreType.DMA((1,)),
        ],
        compiler_params=pltpu.CompilerParams(
            dimension_semantics=("parallel", "parallel"),
            vmem_limit_bytes=vmem_budget),
        cost_estimate=pl.CostEstimate(flops=conv_flops, transcendentals=0,
                                      bytes_accessed=conv_bytes),
    )(xflat, w_deep)

    # ---- glue (tiny, O(N*W*C_out)): BN finalize + modulation + fused affine --
    stats_c = stats.reshape(n, num_ht, 2, w, c_out).sum(axis=(0, 1, 3))
    count = jnp.float32(n * h * w)
    mean = stats_c[0] / count
    var = jnp.maximum(stats_c[1] / count - mean * mean, 0.0)  # clamp cancellation
    rstd = lax.rsqrt(var + BN_EPS)
    a_c = bn_w * rstd                                     # per-channel scale
    b_c = bn_b - bn_w * mean * rstd                       # per-channel shift

    mod = jnp.einsum("oc,ncl->nol", w_mod[:, :, 0], cond) + b_mod[None, :, None]
    gamma, beta = mod[:, :c_out, :], mod[:, c_out:, :]    # (N, C_out, W)
    scale = gamma * a_c[None, :, None]                    # fold BN into gamma
    shift = gamma * b_c[None, :, None] + beta
    scale = jnp.transpose(scale, (0, 2, 1)).reshape(n, 1, lanes).astype(jnp.float32)
    shift = jnp.transpose(shift, (0, 2, 1)).reshape(n, 1, lanes).astype(jnp.float32)

    # ---- phase 2: relu(scale*h + shift), lane-dense, aliased in place --------
    per_row2 = 4 * lanes * ebytes                         # h in x2 + out x2
    fixed2 = 4 * lanes * 4
    rt2 = _pick_row_tile(h, per_row2, fixed2, int(vmem_budget * 0.7))
    num_ht2 = h // rt2
    app_bytes = 2 * n * h * lanes * ebytes + 2 * n * lanes * 4
    out_flat = pl.pallas_call(
        apply_mod_kernel,
        grid=(n, num_ht2),
        in_specs=[
            pl.BlockSpec((None, rt2, lanes), lambda i, j: (i, j, 0)),
            pl.BlockSpec((None, 1, lanes), lambda i, j: (i, 0, 0)),
            pl.BlockSpec((None, 1, lanes), lambda i, j: (i, 0, 0)),
        ],
        out_specs=pl.BlockSpec((None, rt2, lanes), lambda i, j: (i, j, 0)),
        out_shape=jax.ShapeDtypeStruct((n, h, lanes), cdt),
        input_output_aliases={0: 0},                      # overwrite h in place
        compiler_params=pltpu.CompilerParams(
            dimension_semantics=("parallel", "parallel"),
            vmem_limit_bytes=vmem_budget),
        cost_estimate=pl.CostEstimate(flops=2 * n * h * lanes,
                                      transcendentals=0,
                                      bytes_accessed=app_bytes),
    )(h_conv, scale, shift)

    out_nhwc = out_flat.reshape(n, h, w, c_out)
    # TODO(synk): a fused multi-block pipeline would consume this NHWC-flat
    # layout directly; the NCHW transpose below only matches the PyTorch module
    # boundary (single XLA pass, fused with the f32 upcast in the bf16 path).
    return jnp.transpose(out_nhwc, (0, 3, 1, 2)).astype(jnp.float32)


# ----------------------------------------------------------------------------
# Pure-JAX reference (same math, XLA ops) for validation
# ----------------------------------------------------------------------------
def reference(x_nchw, cond, params, padding=1):
    w_conv, b_conv, bn_w, bn_b, w_mod, b_mod = params
    c_out = w_conv.shape[0]
    h = lax.conv_general_dilated(
        x_nchw, w_conv, window_strides=(1, 1),
        padding=((padding, padding), (padding, padding)),
        dimension_numbers=("NCHW", "OIHW", "NCHW"))
    h = h + b_conv[None, :, None, None]      # bias kept here; cancels under BN
    mean = jnp.mean(h, axis=(0, 2, 3), keepdims=True)
    var = jnp.mean((h - mean) ** 2, axis=(0, 2, 3), keepdims=True)
    h = (h - mean) * lax.rsqrt(var + BN_EPS)
    h = h * bn_w[None, :, None, None] + bn_b[None, :, None, None]
    mod = jnp.einsum("oc,ncl->nol", w_mod[:, :, 0], cond) + b_mod[None, :, None]
    gamma, beta = mod[:, :c_out, :], mod[:, c_out:, :]    # (N, C_out, L)
    h = gamma[:, :, None, :] * h + beta[:, :, None, :]
    return jnp.maximum(h, 0.0)


# ----------------------------------------------------------------------------
if __name__ == "__main__":
    N, C_IN, C_OUT, H, W = 2, 4, 8, 16, 16
    COND_DIM, L = 6, W        # L must equal W for the gamma/beta broadcast
    K = 3

    key = jax.random.PRNGKey(0)
    ks = jax.random.split(key, 6)
    x = jax.random.normal(ks[0], (N, C_IN, H, W), jnp.float32)
    cond = jax.random.normal(ks[1], (N, COND_DIM, L), jnp.float32)

    # Deterministic synthetic parameters (shapes per nn.Module __init__).
    w_conv = 0.1 * jax.random.normal(ks[2], (C_OUT, C_IN, K, K), jnp.float32)
    b_conv = 0.1 * jax.random.normal(ks[3], (C_OUT,), jnp.float32)
    bn_w = jnp.ones((C_OUT,), jnp.float32)     # BatchNorm2d default init
    bn_b = jnp.zeros((C_OUT,), jnp.float32)
    w_mod = 0.1 * jax.random.normal(ks[4], (2 * C_OUT, COND_DIM, 1), jnp.float32)
    b_mod = 0.1 * jax.random.normal(ks[5], (2 * C_OUT,), jnp.float32)
    params = (w_conv, b_conv, bn_w, bn_b, w_mod, b_mod)

    ref = jax.block_until_ready(reference(x, cond, params, padding=K // 2))

    # f32 MXU path: strict correctness check.
    out_f32 = jax.block_until_ready(
        modulated_conv_block_2d(x, cond, params, kernel_size=K, use_bf16=False))
    assert out_f32.shape == (N, C_OUT, H, W), out_f32.shape
    err32 = float(jnp.max(jnp.abs(out_f32 - ref)))
    assert jnp.allclose(out_f32, ref, atol=1e-3, rtol=1e-3), err32

    # bf16 MXU path (default: halved DMA bytes, full-rate MXU on v5e/v6e/v7x):
    # stats stay f32-accumulated, so only activation rounding differs.
    out_bf16 = jax.block_until_ready(
        modulated_conv_block_2d(x, cond, params, kernel_size=K))
    err16 = float(jnp.max(jnp.abs(out_bf16 - ref)))
    assert out_bf16.shape == (N, C_OUT, H, W) and err16 < 1.5e-1, err16

    print("KERNEL_OK")
</pallas_src>

<mosaic_0001>
module attributes {stable_mosaic.version = 11 : i64} {
  func.func @conv_stats_kernel(%arg0: i32, %arg1: i32, %arg2: memref<2x18x128xf32, #tpu.memory_space<any>>, %arg3: memref<384x128xf32, #tpu.memory_space<vmem>>, %arg4: memref<1x16x128xf32, #tpu.memory_space<vmem>>, %arg5: memref<1x1x2x128xf32, #tpu.memory_space<vmem>>, %arg6: memref<18x128xf32, #tpu.memory_space<vmem>>, %arg7: memref<1x!tpu.dma_semaphore, #tpu.memory_space<semaphore_mem>>) attributes {dimension_semantics = [#tpu.dimension_semantics<parallel>, #tpu.dimension_semantics<parallel>], iteration_bounds = array<i64: 2, 1>, scalar_prefetch = 0 : i64, scratch_operands = 2 : i64, tpu.core_type = #tpu.core_type<tc>, window_params = [{}, {pipeline_mode = #tpu.pipeline_mode<synchronous>, transform_indices = @transform_1, window_bounds = array<i64: 384, 128>}, {transform_indices = @transform_2, window_bounds = array<i64: 1, 16, 128>}, {transform_indices = @transform_3, window_bounds = array<i64: 1, 1, 2, 128>}]} {
    %c16_i32 = arith.constant 16 : i32
    %0 = arith.muli %arg1, %c16_i32 : i32
    %1 = tpu.assume_multiple %0, 8 : i32
    %c0_i32 = arith.constant 0 : i32
    %c0_i32_0 = arith.constant 0 : i32
    %2 = tpu.memref_slice %arg2[%arg0, %1, %c0_i32_0] : memref<2x18x128xf32, #tpu.memory_space<any>> -> memref<1x18x128xf32, #tpu.memory_space<any>>
    %3 = tpu.memref_squeeze %2 : memref<1x18x128xf32, #tpu.memory_space<any>> -> memref<18x128xf32, #tpu.memory_space<any>>
    %4 = tpu.memref_slice %arg7[%c0_i32] : memref<1x!tpu.dma_semaphore, #tpu.memory_space<semaphore_mem>> -> memref<1x!tpu.dma_semaphore, #tpu.memory_space<semaphore_mem>>
    %5 = tpu.memref_squeeze %4 : memref<1x!tpu.dma_semaphore, #tpu.memory_space<semaphore_mem>> -> memref<!tpu.dma_semaphore, #tpu.memory_space<semaphore_mem>>
    tpu.enqueue_dma source(%3 : memref<18x128xf32, #tpu.memory_space<any>>) target(%arg6 : memref<18x128xf32, #tpu.memory_space<vmem>>) target_semaphore(%5 : memref<!tpu.dma_semaphore, #tpu.memory_space<semaphore_mem>>)
    %c0_i32_1 = arith.constant 0 : i32
    %c0_i32_2 = arith.constant 0 : i32
    %6 = tpu.memref_slice %arg2[%arg0, %1, %c0_i32_2] : memref<2x18x128xf32, #tpu.memory_space<any>> -> memref<1x18x128xf32, #tpu.memory_space<any>>
    %7 = tpu.memref_squeeze %6 : memref<1x18x128xf32, #tpu.memory_space<any>> -> memref<18x128xf32, #tpu.memory_space<any>>
    %8 = tpu.memref_slice %arg7[%c0_i32_1] : memref<1x!tpu.dma_semaphore, #tpu.memory_space<semaphore_mem>> -> memref<1x!tpu.dma_semaphore, #tpu.memory_space<semaphore_mem>>
    %9 = tpu.memref_squeeze %8 : memref<1x!tpu.dma_semaphore, #tpu.memory_space<semaphore_mem>> -> memref<!tpu.dma_semaphore, #tpu.memory_space<semaphore_mem>>
    tpu.wait_dma2 semaphore(%9 : memref<!tpu.dma_semaphore, #tpu.memory_space<semaphore_mem>>) src(%7 : memref<18x128xf32, #tpu.memory_space<any>>) dst(%arg6 : memref<18x128xf32, #tpu.memory_space<vmem>>)
    %c0 = arith.constant 0 : index
    %c0_3 = arith.constant 0 : index
    %10 = vector.load %arg6[%c0, %c0_3] : memref<18x128xf32, #tpu.memory_space<vmem>>, vector<16x128xf32>
    %c1 = arith.constant 1 : index
    %c0_4 = arith.constant 0 : index
    %11 = vector.load %arg6[%c1, %c0_4] : memref<18x128xf32, #tpu.memory_space<vmem>>, vector<16x128xf32>
    %c2 = arith.constant 2 : index
    %c0_5 = arith.constant 0 : index
    %12 = vector.load %arg6[%c2, %c0_5] : memref<18x128xf32, #tpu.memory_space<vmem>>, vector<16x128xf32>
    %13 = tpu.concatenate %10, %11, %12 in 1 : vector<16x128xf32>, vector<16x128xf32>, vector<16x128xf32> -> vector<16x384xf32>
    %c0_6 = arith.constant 0 : index
    %c0_7 = arith.constant 0 : index
    %14 = vector.load %arg3[%c0_6, %c0_7] : memref<384x128xf32, #tpu.memory_space<vmem>>, vector<384x128xf32>
    %cst = arith.constant dense<0.000000e+00> : vector<16x128xf32>
    %15 = tpu.matmul %13, %14, %cst {dimension_numbers = #tpu.dot_dimension_numbers<[1], [0], [0], [1], [0, 0, 1, 1], [], []>} : vector<16x384xf32>, vector<384x128xf32>, vector<16x128xf32> -> vector<16x128xf32>
    %c0_8 = arith.constant 0 : index
    %c0_9 = arith.constant 0 : index
    %c0_10 = arith.constant 0 : index
    %16 = vector.load %arg4[%c0_8, %c0_9, %c0_10] : memref<1x16x128xf32, #tpu.memory_space<vmem>>, vector<1x16x128xf32>
    %17 = vector.shape_cast %16 : vector<1x16x128xf32> to vector<16x128xf32>
    %18 = vector.shape_cast %15 : vector<16x128xf32> to vector<1x16x128xf32>
    tpu.vector_store %arg4[%c0_8, %c0_9, %c0_10], %18 {strides = array<i32>} : memref<1x16x128xf32, #tpu.memory_space<vmem>>, vector<1x16x128xf32>,
    %cst_11 = arith.constant dense<0.000000e+00> : vector<128xf32>
    %19 = vector.multi_reduction <add>, %15, %cst_11 [0] : vector<16x128xf32> to vector<128xf32>
    %20 = vector.shape_cast %19 : vector<128xf32> to vector<1x128xf32>
    %c0_12 = arith.constant 0 : index
    %c0_13 = arith.constant 0 : index
    %c0_14 = arith.constant 0 : index
    %c0_15 = arith.constant 0 : index
    %21 = vector.load %arg5[%c0_12, %c0_13, %c0_14, %c0_15] : memref<1x1x2x128xf32, #tpu.memory_space<vmem>>, vector<1x1x1x128xf32>
    %22 = vector.shape_cast %21 : vector<1x1x1x128xf32> to vector<1x128xf32>
    %23 = vector.shape_cast %20 : vector<1x128xf32> to vector<1x1x1x128xf32>
    tpu.vector_store %arg5[%c0_12, %c0_13, %c0_14, %c0_15], %23 {strides = array<i32>} : memref<1x1x2x128xf32, #tpu.memory_space<vmem>>, vector<1x1x1x128xf32>,
    %24 = arith.mulf %15, %15 : vector<16x128xf32>
    %cst_16 = arith.constant dense<0.000000e+00> : vector<128xf32>
    %25 = vector.multi_reduction <add>, %24, %cst_16 [0] : vector<16x128xf32> to vector<128xf32>
    %26 = vector.shape_cast %25 : vector<128xf32> to vector<1x128xf32>
    %c0_17 = arith.constant 0 : index
    %c0_18 = arith.constant 0 : index
    %c1_19 = arith.constant 1 : index
    %c0_20 = arith.constant 0 : index
    %27 = vector.load %arg5[%c0_17, %c0_18, %c1_19, %c0_20] : memref<1x1x2x128xf32, #tpu.memory_space<vmem>>, vector<1x1x1x128xf32>
    %28 = vector.shape_cast %27 : vector<1x1x1x128xf32> to vector<1x128xf32>
    %29 = vector.shape_cast %26 : vector<1x128xf32> to vector<1x1x1x128xf32>
    tpu.vector_store %arg5[%c0_17, %c0_18, %c1_19, %c0_20], %29 {strides = array<i32>} : memref<1x1x2x128xf32, #tpu.memory_space<vmem>>, vector<1x1x1x128xf32>,
    return
  }
  func.func @transform_1(%arg0: i32, %arg1: i32) -> (i32, i32) {
    %c0_i32 = arith.constant 0 : i32
    %c0_i32_0 = arith.constant 0 : i32
    %c0_i32_1 = arith.constant 0 : i32
    return %c0_i32, %c0_i32_0 : i32, i32
  }
  func.func @transform_2(%arg0: i32, %arg1: i32) -> (i32, i32, i32) {
    %c0_i32 = arith.constant 0 : i32
    %c0_i32_0 = arith.constant 0 : i32
    return %arg0, %arg1, %c0_i32 : i32, i32, i32
  }
  func.func @transform_3(%arg0: i32, %arg1: i32) -> (i32, i32, i32, i32) {
    %c0_i32 = arith.constant 0 : i32
    %c0_i32_0 = arith.constant 0 : i32
    %c0_i32_1 = arith.constant 0 : i32
    return %arg0, %arg1, %c0_i32, %c0_i32_0 : i32, i32, i32, i32
  }
}

module attributes {stable_mosaic.version = 11 : i64} {
  func.func @apply_mod_kernel(%arg0: i32, %arg1: i32, %arg2: memref<1x16x128xf32, #tpu.memory_space<vmem>>, %arg3: memref<1x1x128xf32, #tpu.memory_space<vmem>>, %arg4: memref<1x1x128xf32, #tpu.memory_space<vmem>>, %arg5: memref<1x16x128xf32, #tpu.memory_space<vmem>>) attributes {dimension_semantics = [#tpu.dimension_semantics<parallel>, #tpu.dimension_semantics<parallel>], iteration_bounds = array<i64: 2, 1>, scalar_prefetch = 0 : i64, scratch_operands = 0 : i64, tpu.core_type = #tpu.core_type<tc>, window_params = [{transform_indices = @transform_0, window_bounds = array<i64: 1, 16, 128>}, {transform_indices = @transform_1, window_bounds = array<i64: 1, 1, 128>}, {transform_indices = @transform_2, window_bounds = array<i64: 1, 1, 128>}, {transform_indices = @transform_3, window_bounds = array<i64: 1, 16, 128>}]} {
    %c0 = arith.constant 0 : index
    %c0_0 = arith.constant 0 : index
    %c0_1 = arith.constant 0 : index
    %0 = vector.load %arg2[%c0, %c0_0, %c0_1] : memref<1x16x128xf32, #tpu.memory_space<vmem>>, vector<1x16x128xf32>
    %1 = vector.shape_cast %0 : vector<1x16x128xf32> to vector<16x128xf32>
    %c0_2 = arith.constant 0 : index
    %c0_3 = arith.constant 0 : index
    %c0_4 = arith.constant 0 : index
    %2 = vector.load %arg3[%c0_2, %c0_3, %c0_4] : memref<1x1x128xf32, #tpu.memory_space<vmem>>, vector<1x1x128xf32>
    %3 = vector.shape_cast %2 : vector<1x1x128xf32> to vector<1x128xf32>
    %4 = vector.broadcast %3 : vector<1x128xf32> to vector<16x128xf32>
    %5 = arith.mulf %1, %4 : vector<16x128xf32>
    %c0_5 = arith.constant 0 : index
    %c0_6 = arith.constant 0 : index
    %c0_7 = arith.constant 0 : index
    %6 = vector.load %arg4[%c0_5, %c0_6, %c0_7] : memref<1x1x128xf32, #tpu.memory_space<vmem>>, vector<1x1x128xf32>
    %7 = vector.shape_cast %6 : vector<1x1x128xf32> to vector<1x128xf32>
    %8 = vector.broadcast %7 : vector<1x128xf32> to vector<16x128xf32>
    %9 = arith.addf %5, %8 : vector<16x128xf32>
    %cst = arith.constant 0.000000e+00 : f32
    %10 = vector.broadcast %cst : f32 to vector<16x128xf32>
    %11 = arith.maximumf %9, %10 : vector<16x128xf32>
    %c0_8 = arith.constant 0 : index
    %c0_9 = arith.constant 0 : index
    %c0_10 = arith.constant 0 : index
    %12 = vector.load %arg5[%c0_8, %c0_9, %c0_10] : memref<1x16x128xf32, #tpu.memory_space<vmem>>, vector<1x16x128xf32>
    %13 = vector.shape_cast %12 : vector<1x16x128xf32> to vector<16x128xf32>
    %14 = vector.shape_cast %11 : vector<16x128xf32> to vector<1x16x128xf32>
    tpu.vector_store %arg5[%c0_8, %c0_9, %c0_10], %14 {strides = array<i32>} : memref<1x16x128xf32, #tpu.memory_space<vmem>>, vector<1x16x128xf32>,
    return
  }
  func.func @transform_0(%arg0: i32, %arg1: i32) -> (i32, i32, i32) {
    %c0_i32 = arith.constant 0 : i32
    %c0_i32_0 = arith.constant 0 : i32
    return %arg0, %arg1, %c0_i32 : i32, i32, i32
  }
  func.func @transform_1(%arg0: i32, %arg1: i32) -> (i32, i32, i32) {
    %c0_i32 = arith.constant 0 : i32
    %c0_i32_0 = arith.constant 0 : i32
    %c0_i32_1 = arith.constant 0 : i32
    return %arg0, %c0_i32, %c0_i32_0 : i32, i32, i32
  }
  func.func @transform_2(%arg0: i32, %arg1: i32) -> (i32, i32, i32) {
    %c0_i32 = arith.constant 0 : i32
    %c0_i32_0 = arith.constant 0 : i32
    %c0_i32_1 = arith.constant 0 : i32
    return %arg0, %c0_i32, %c0_i32_0 : i32, i32, i32
  }
  func.func @transform_3(%arg0: i32, %arg1: i32) -> (i32, i32, i32) {
    %c0_i32 = arith.constant 0 : i32
    %c0_i32_0 = arith.constant 0 : i32
    return %arg0, %arg1, %c0_i32 : i32, i32, i32
  }
}

</mosaic_0001>

<bundles_post_ra>
// kernel: modulated_conv_block_2d.2
= control target key start
LH: loop header
LB: loop body
LE: loop exit
PB: predicated region body
PF: predicated region fallthrough
CT: control target
= control target key end

     0   :  { %s575_s12 = smov 0   ;;  %s577_s13 = smov 0   ;;  %s763_s0 = inlined_call_operand.vmem [shape: f32[2,18,128], index: 0, kind: input, shape index: {}]   ;;  %s764_s1 = inlined_call_operand.vmem [shape: f32[384,128], index: 1, kind: input, shape index: {}]   ;;  %s765_s2 = inlined_call_operand.vmem [shape: f32[2,16,128], index: 2, kind: output, shape index: {0}]   ;;  %s766_s3 = inlined_call_operand.vmem [shape: f32[2,1,2,128], index: 3, kind: output, shape index: {1}]  }
   0x1   :  { %s579_s14 = smov 0  }
   0x2 LB: > { %s26_s15 = sadd.s32 1, %s549_s13  ;;  %p480_p0 = scmp.ge.s32.totalorder %s553_s14, 1  ;;  %s553_s14 = sphi %s579_s14, %s14_s14   ;;  %s549_s13 = sphi %s577_s13, %s768_s13   ;;  %s545_s12 = sphi %s575_s12, %s767_s12  }
   0x3   : > { %p28_p1 = scmp.ge.s32.totalorder %s26_s15, 2  ;;  %p122_p2 = scmp.lt.s32.totalorder %s553_s14, 3 }
   0x5   : > { %s770_s15 = smov (%p28_p1, %s26_s15), 0  ;;  %p123_p3 = pnand %p480_p0, %p122_p2 }
   0x6   : > { %p151_p4 = scmp.lt.s32.totalorder (!%p123_p3), %s545_s12, 1  ;;  %s168_s16 = smul.u32 (!%p123_p3), 24, %s545_s12 }
   0x7   : > { %126 = sbr.rel (%p123_p3) target bundleno = 209 (0xd1), region = 24 }
   0x8   : > { %s170_s19 = scalar_lea.vmem (!%p123_p3), %s763_s0, %s168_s16 }
   0xc   : > { %s772_s12 = smov (!%p151_p4, %s545_s12), 1  ;;  %v183_v0 = vld [vmem:[%s170_s19] sm:$0xff]  ;;  %v185_v1 = vld [vmem:[%s170_s19 + $0x8] sm:$0xff]  ;;  %v484_v2 = vld [vmem:[%s170_s19 + $0x10] sm:$0x3] }
   0xd   : > { %s488_s20 = sshll.u32 %s772_s12, 4  ;;  %s483_s21 = sshll.u32 %s772_s12, 1  ;;  %184 = vst [vmem:[#allocation2] sm:$0xff] %v183_v0 }
   0xe   : > { %s599_s24 = scalar_lea.vmem %s765_s2, %s488_s20  ;;  %s604_s27 = scalar_lea.vmem %s766_s3, %s483_s21  ;;  %186 = vst [vmem:[#allocation2 + $0x8] sm:$0xff] %v185_v1 }
   0xf   : > { %198 = vst [vmem:[#allocation2 + $0x10] sm:$0x3] %v484_v2 }
  0x10   : > { %202 = vsyncadd [#allocation3], 288 }
  0x11   : > { %541 = dma.done.wait [#allocation3], 288 }
  0x12   : > { %542 = vsyncadd [#allocation3], 4294967008  ;;  %v259_v3 = vld [vmem:[%s764_s1 + $0x178] sm:$0xff]  ;;  %v258_v4 = vld [vmem:[%s764_s1 + $0x170] sm:$0xff] }
  0x13   : > { %v227_v5 = vld [vmem:[%s764_s1 + $0x78] sm:$0xff]  ;;  %306 = vmatpush.msra.mxu2 %v259_v3  ;;  %v226_v7 = vld [vmem:[%s764_s1 + $0x70] sm:$0xff]  ;;  %v257_v8 = vld [vmem:[%s764_s1 + $0x168] sm:$0xff] }
  0x14   : > { %260 = vmatpush.msra.mxu0 %v227_v5  ;;  %v243_v6 = vld [vmem:[%s764_s1 + $0xf8] sm:$0xff]  ;;  %489 = vmatpush.msra.mxu3 %v227_v5  ;;  %v242_v9 = vld [vmem:[%s764_s1 + $0xf0] sm:$0xff]  ;;  %v225_v10 = vld [vmem:[%s764_s1 + $0x68] sm:$0xff] }
  0x15   : > { %283 = vmatpush.msra.mxu1 %v243_v6  ;;  %307 = vmatpush.msra.mxu2 %v258_v4  ;;  %v241_v11 = vld [vmem:[%s764_s1 + $0xe8] sm:$0xff]  ;;  %v256_v12 = vld [vmem:[%s764_s1 + $0x160] sm:$0xff]  ;;  %v255_v15 = vld [vmem:[%s764_s1 + $0x158] sm:$0xff] }
  0x16   : > { %261 = vmatpush.msra.mxu0 %v226_v7  ;;  %490 = vmatpush.msra.mxu3 %v226_v7  ;;  %v224_v13 = vld [vmem:[%s764_s1 + $0x60] sm:$0xff]  ;;  %v223_v16 = vld [vmem:[%s764_s1 + $0x58] sm:$0xff]  ;;  %v254_v18 = vld [vmem:[%s764_s1 + $0x150] sm:$0xff] }
  0x17   : > { %284 = vmatpush.msra.mxu1 %v242_v9  ;;  %308 = vmatpush.msra.mxu2 %v257_v8  ;;  %v240_v14 = vld [vmem:[%s764_s1 + $0xe0] sm:$0xff]  ;;  %v239_v17 = vld [vmem:[%s764_s1 + $0xd8] sm:$0xff]  ;;  %v222_v19 = vld [vmem:[%s764_s1 + $0x50] sm:$0xff] }
  0x18   : > { %262 = vmatpush.msra.mxu0 %v225_v10  ;;  %491 = vmatpush.msra.mxu3 %v225_v10  ;;  %v238_v20 = vld [vmem:[%s764_s1 + $0xd0] sm:$0xff]  ;;  %v253_v21 = vld [vmem:[%s764_s1 + $0x148] sm:$0xff]  ;;  %v252_v24 = vld [vmem:[%s764_s1 + $0x140] sm:$0xff] }
  0x19   : > { %285 = vmatpush.msra.mxu1 %v241_v11  ;;  %309 = vmatpush.msra.mxu2 %v256_v12  ;;  %v221_v22 = vld [vmem:[%s764_s1 + $0x48] sm:$0xff]  ;;  %v220_v25 = vld [vmem:[%s764_s1 + $0x40] sm:$0xff]  ;;  %v251_v27 = vld [vmem:[%s764_s1 + $0x138] sm:$0xff] }
  0x1a   : > { %263 = vmatpush.msra.mxu0 %v224_v13  ;;  %492 = vmatpush.msra.mxu3 %v224_v13  ;;  %v237_v23 = vld [vmem:[%s764_s1 + $0xc8] sm:$0xff]  ;;  %v236_v26 = vld [vmem:[%s764_s1 + $0xc0] sm:$0xff]  ;;  %v219_v28 = vld [vmem:[%s764_s1 + $0x38] sm:$0xff] }
  0x1b   : > { %286 = vmatpush.msra.mxu1 %v240_v14  ;;  %310 = vmatpush.msra.mxu2 %v255_v15  ;;  %v235_v29 = vld [vmem:[%s764_s1 + $0xb8] sm:$0xff]  ;;  %v250_v30 = vld [vmem:[%s764_s1 + $0x130] sm:$0xff]  ;;  %v249_v33 = vld [vmem:[%s764_s1 + $0x128] sm:$0xff] }
  0x1c   : > { %264 = vmatpush.msra.mxu0 %v223_v16  ;;  %493 = vmatpush.msra.mxu3 %v223_v16  ;;  %v218_v31 = vld [vmem:[%s764_s1 + $0x30] sm:$0xff]  ;;  %v217_v34 = vld [vmem:[%s764_s1 + $0x28] sm:$0xff]  ;;  %v248_v36 = vld [vmem:[%s764_s1 + $0x120] sm:$0xff] }
  0x1d   : > { %287 = vmatpush.msra.mxu1 %v239_v17  ;;  %311 = vmatpush.msra.mxu2 %v254_v18  ;;  %v234_v32 = vld [vmem:[%s764_s1 + $0xb0] sm:$0xff]  ;;  %v233_v35 = vld [vmem:[%s764_s1 + $0xa8] sm:$0xff]  ;;  %v216_v37 = vld [vmem:[%s764_s1 + $0x20] sm:$0xff] }
  0x1e   : > { %265 = vmatpush.msra.mxu0 %v222_v19  ;;  %494 = vmatpush.msra.mxu3 %v222_v19  ;;  %v232_v38 = vld [vmem:[%s764_s1 + $0xa0] sm:$0xff]  ;;  %v247_v39 = vld [vmem:[%s764_s1 + $0x118] sm:$0xff]  ;;  %v246_v42 = vld [vmem:[%s764_s1 + $0x110] sm:$0xff] }
  0x1f   : > { %288 = vmatpush.msra.mxu1 %v238_v20  ;;  %312 = vmatpush.msra.mxu2 %v253_v21  ;;  %v215_v40 = vld [vmem:[%s764_s1 + $0x18] sm:$0xff]  ;;  %v214_v43 = vld [vmem:[%s764_s1 + $0x10] sm:$0xff]  ;;  %v245_v45 = vld [vmem:[%s764_s1 + $0x108] sm:$0xff] }
  0x20   : > { %266 = vmatpush.msra.mxu0 %v221_v22  ;;  %495 = vmatpush.msra.mxu3 %v221_v22  ;;  %v231_v41 = vld [vmem:[%s764_s1 + $0x98] sm:$0xff]  ;;  %v230_v44 = vld [vmem:[%s764_s1 + $0x90] sm:$0xff]  ;;  %v213_v46 = vld [vmem:[%s764_s1 + $0x8] sm:$0xff] }
  0x21   : > { %289 = vmatpush.msra.mxu1 %v237_v23  ;;  %313 = vmatpush.msra.mxu2 %v252_v24  ;;  %v229_v47 = vld [vmem:[%s764_s1 + $0x88] sm:$0xff]  ;;  %v244_v48 = vld [vmem:[%s764_s1 + $0x100] sm:$0xff] }
  0x22   : > { %267 = vmatpush.msra.mxu0 %v220_v25  ;;  %496 = vmatpush.msra.mxu3 %v220_v25  ;;  %v212_v49 = vld [vmem:[%s764_s1] sm:$0xff]  ;;  %v207_v54 = vld [vmem:[#allocation2 + $0x8] sm:$0xff] }
  0x23   : > { %290 = vmatpush.msra.mxu1 %v236_v26  ;;  %314 = vmatpush.msra.mxu2 %v251_v27  ;;  %v210_v50 = vld [vmem:[#allocation2 + $0x2] sm:$0xff]  ;;  %v211_v55 = vld [vmem:[#allocation2 + $0xa] sm:$0xff] }
  0x24   : > { %268 = vmatpush.msra.mxu0 %v219_v28  ;;  %497 = vmatpush.msra.mxu3 %v219_v28  ;;  %v228_v51 = vld [vmem:[%s764_s1 + $0x80] sm:$0xff]  ;;  %v209_v56 = vld [vmem:[#allocation2 + $0x9] sm:$0xff] }
  0x25   : > { %291 = vmatpush.msra.mxu1 %v235_v29  ;;  %315 = vmatpush.msra.mxu2 %v250_v30  ;;  %v206_v52 = vld [vmem:[#allocation2] sm:$0xff] }
  0x26   : > { %269 = vmatpush.msra.mxu0 %v218_v31  ;;  %498 = vmatpush.msra.mxu3 %v218_v31  ;;  %v208_v53 = vld [vmem:[#allocation2 + $0x1] sm:$0xff] }
  0x27   : > { %292 = vmatpush.msra.mxu1 %v234_v32  ;;  %316 = vmatpush.msra.mxu2 %v249_v33 }
  0x28   : > { %270 = vmatpush.msra.mxu0 %v217_v34  ;;  %499 = vmatpush.msra.mxu3 %v217_v34 }
  0x29   : > { %293 = vmatpush.msra.mxu1 %v233_v35  ;;  %317 = vmatpush.msra.mxu2 %v248_v36 }
  0x2a   : > { %271 = vmatpush.msra.mxu0 %v216_v37  ;;  %500 = vmatpush.msra.mxu3 %v216_v37 }
  0x2b   : > { %294 = vmatpush.msra.mxu1 %v232_v38  ;;  %318 = vmatpush.msra.mxu2 %v247_v39 }
  0x2c   : > { %272 = vmatpush.msra.mxu0 %v215_v40  ;;  %501 = vmatpush.msra.mxu3 %v215_v40 }
  0x2d   : > { %295 = vmatpush.msra.mxu1 %v231_v41  ;;  %319 = vmatpush.msra.mxu2 %v246_v42 }
  0x2e   : > { %273 = vmatpush.msra.mxu0 %v214_v43  ;;  %502 = vmatpush.msra.mxu3 %v214_v43 }
  0x2f   : > { %296 = vmatpush.msra.mxu1 %v230_v44  ;;  %320 = vmatpush.msra.mxu2 %v245_v45 }
  0x30   : > { %274 = vmatpush.msra.mxu0 %v213_v46  ;;  %503 = vmatpush.msra.mxu3 %v213_v46 }
  0x31   : > { %297 = vmatpush.msra.mxu1 %v229_v47  ;;  %321 = vmatpush.msra.mxu2 %v244_v48 }
  0x32   : > { %275 = vmatpush.msra.mxu0 %v212_v49  ;;  %322 = vmatmul.f32.vlgmr.msra.gmra.mxu2 %v210_v50 }
  0x33   : > { %298 = vmatpush.msra.mxu1 %v228_v51  ;;  %276 = vmatmul.f32.vlgmr.msra.gmra.mxu0 %v206_v52 }
  0x34   : > { %299 = vmatmul.f32.vlgmr.msra.gmra.mxu1 %v208_v53  ;;  %504 = vmatpush.msra.mxu3 %v212_v49 }
  0x35   : > { %279 = vmatmul.f32.vlgmr.msra.gmra.mxu3 %v207_v54 }
  0x3a   : > { %325 = vmatmul.f32.gmra.mxu2 %v211_v55 }
  0x3c   : > { %302 = vmatmul.f32.gmra.mxu1 %v209_v56 }
  0xb0   : > { %v277_v57 = vpop.f32.mrf.mxu0 }
  0xb1   : > { %v300_v58 = vpop.f32.mrf.mxu1 }
  0xb2   : > { %v301_v59 = vadd.f32 %v300_v58, %v277_v57 }
  0xb5   : > { %v323_v60 = vpop.f32.mrf.mxu2 }
  0xb6   : > { %v324_v61 = vadd.f32 %v323_v60, %v301_v59 }
  0xb8   : > { %329 = vst [vmem:[%s599_s24] sm:$0xff] %v324_v61  ;;  %v280_v62 = vpop.f32.mrf.mxu3  ;;  %v339_v3 = vmul.f32 %v324_v61, %v324_v61 }
  0xb9   : > { %v303_v63 = vpop.f32.mrf.mxu1 }
  0xba   : > { %v304_v0 = vadd.f32 %v303_v63, %v280_v62 }
  0xbd   : > { %v326_v1 = vpop.f32.mrf.mxu2 }
  0xbe   : > { %v327_v2 = vadd.f32 %v326_v1, %v304_v0 }
  0xc0   : > { %330 = vst [vmem:[%s599_s24 + $0x8] sm:$0xff] %v327_v2  ;;  %v331_v4 = vadd.f32 %v327_v2, %v324_v61  ;;  %v340_v5 = vmul.f32 %v327_v2, %v327_v2 }
  0xc2   : > { %v332_v6 = vrot.slane %v331_v4, 4  ;;  %v341_v7 = vadd.f32 %v340_v5, %v339_v3 }
  0xc4   : > { %v333_v8 = vadd.f32 %v332_v6, %v331_v4  ;;  %v342_v9 = vrot.slane %v341_v7, 4 }
  0xc6   : > { %v334_v10 = vrot.slane %v333_v8, 2  ;;  %v343_v11 = vadd.f32 %v342_v9, %v341_v7 }
  0xc8   : > { %v335_v12 = vadd.f32 %v334_v10, %v333_v8  ;;  %v344_v13 = vrot.slane %v343_v11, 2 }
  0xca   : > { %v336_v14 = vrot.slane %v335_v12, 1  ;;  %v345_v15 = vadd.f32 %v344_v13, %v343_v11 }
  0xcc   : > { %v337_v16 = vadd.f32 %v336_v14, %v335_v12  ;;  %v346_v17 = vrot.slane %v345_v15, 1 }
  0xce   : > { %338 = vst [vmem:[%s604_s27] sm:$0x1] %v337_v16  ;;  %v347_v18 = vadd.f32 %v346_v17, %v345_v15 }
  0xd0   : > { %348 = vst [vmem:[%s604_s27 + $0x1] sm:$0x1] %v347_v18 }
  0xd1 PF: > { %s14_s14 = sadd.s32 1, %s553_s14   ;;  %s767_s12 = smov %s549_s13 }
  0xd2   : > { %p11_p5 = scmp.ge.s32.totalorder %s14_s14, 4   ;;  %s768_s13 = smov %s770_s15 }
  0xd4   :  { %13 = sbr.rel (!%p11_p5) target bundleno = 2 (0x2), region = 96 }
  0xd9   :  { %399 = vsyncmov [#allocation3] }
  0xdc   :  { %s400_s24 = vpop.sfrf %399 }
  0xdd   :  { %p487_p6 = scmp.ne.s32.totalorder %s400_s24, 0 }
  0xdf   :  { %404 = shalt.err (%p487_p6)  }

// kernel: modulated_conv_block_2d.3
= control target key start
LH: loop header
LB: loop body
LE: loop exit
PB: predicated region body
PF: predicated region fallthrough
CT: control target
= control target key end

     0   :  { %s444_s12 = smov 0   ;;  %s446_s13 = smov 0   ;;  %s480_s0 = inlined_call_operand.vmem [shape: f32[2,16,128], index: 0, kind: input, shape index: {}, may-alias: {0,3}]   ;;  %s481_s1 = inlined_call_operand.vmem [shape: f32[2,1,128], index: 1, kind: input, shape index: {}]   ;;  %s482_s2 = inlined_call_operand.vmem [shape: f32[2,1,128], index: 2, kind: input, shape index: {}]   ;;  %s483_s3 = inlined_call_operand.vmem [shape: f32[2,16,128], index: 3, kind: output, shape index: {}, may-alias: {0,3}]  }
   0x1   :  { %s448_s14 = smov 0  }
   0x2 LB: > { %s25_s15 = sadd.s32 1, %s418_s13  ;;  %p365_p0 = scmp.ge.s32.totalorder %s422_s14, 1  ;;  %s422_s14 = sphi %s448_s14, %s13_s14   ;;  %s418_s13 = sphi %s446_s13, %s485_s13   ;;  %s414_s12 = sphi %s444_s12, %s484_s12  }
   0x3   : > { %p27_p1 = scmp.ge.s32.totalorder %s25_s15, 2  ;;  %p174_p2 = scmp.lt.s32.totalorder %s422_s14, 3 }
   0x5   : > { %s487_s15 = smov (%p27_p1, %s25_s15), 0  ;;  %p175_p3 = pnand %p365_p0, %p174_p2 }
   0x6   : > { %p213_p4 = scmp.lt.s32.totalorder (!%p175_p3), %s414_s12, 1 }
   0x7   : > { %178 = sbr.rel (%p175_p3) target bundleno = 24 (0x18), region = 32 }
   0xc   : > { %s489_s12 = smov (!%p213_p4, %s414_s12), 1 }
   0xd   : > { %s372_s16 = sshll.u32 %s489_s12, 4  ;;  %s224_s19 = scalar_lea.vmem %s481_s1, %s489_s12 }
   0xe   : > { %s220_s22 = scalar_lea.vmem %s480_s0, %s372_s16  ;;  %s227_s25 = scalar_lea.vmem %s482_s2, %s489_s12  ;;  %v398_v0 = vld [vmem:[%s224_s19] ss:$0 sm:$0xff] }
   0xf   : > { %v238_v1 = vld [vmem:[%s220_s22] sm:$0xff]  ;;  %v239_v2 = vld [vmem:[%s220_s22 + $0x8] sm:$0xff]  ;;  %s236_s28 = scalar_lea.vmem %s483_s3, %s372_s16 }
  0x10   : > { %v244_v3 = vmul.f32 %v398_v0, %v238_v1  ;;  %v245_v4 = vmul.f32 %v398_v0, %v239_v2  ;;  %v399_v5 = vld [vmem:[%s227_s25] ss:$0 sm:$0xff] }
  0x12   : > { %v250_v6 = vadd.f32 %v399_v5, %v244_v3  ;;  %v251_v7 = vadd.f32 %v399_v5, %v245_v4 }
  0x14   : > { %v252_v8 = vmax.f32 %v250_v6, 0.0  ;;  %v253_v9 = vmax.f32 %v251_v7, 0.0 }
  0x16   : > { %254 = vst [vmem:[%s236_s28] sm:$0xff] %v252_v8 }
  0x17   : > { %255 = vst [vmem:[%s236_s28 + $0x8] sm:$0xff] %v253_v9 }
  0x18 PF: > { %s13_s14 = sadd.s32 1, %s422_s14   ;;  %s484_s12 = smov %s418_s13 }
  0x19   : > { %p10_p5 = scmp.ge.s32.totalorder %s13_s14, 4   ;;  %s485_s13 = smov %s487_s15 }
  0x1b   :  { %12 = sbr.rel (!%p10_p5) target bundleno = 2 (0x2), region = 68 }

</bundles_post_ra>
